<compile_context>
chip_gen: v7x
topology: tpu7x:2x2x1
jax: 0.10.0
libtpu: 0.0.40
codegen_flags: <defaults>
</compile_context>

<pallas_src>
import functools

import jax
import jax.numpy as jnp
from jax.experimental import pallas as pl
from jax.experimental.pallas import tpu as pltpu

LANES = 128            # lane width (last dim)
MAX_TILE_ROWS = 1024   # sublane rows per block (multiple of 32 -> ok for f32/bf16/int8)
NSPLIT = 2             # leading "parallel" grid axis (uses both TensorCores on v7x)


def _sums_kernel(x_ref, t_ref, out_ref, *, tile_rows, rows, nsplit, needs_mask):
    c = pl.program_id(0)   # "parallel" (core) axis
    i = pl.program_id(1)   # "arbitrary" (reduction) axis

    @pl.when(i == 0)
    def _init():
        out_ref[...] = jnp.zeros_like(out_ref)

    x = x_ref[...].astype(jnp.float32)
    t = t_ref[...].astype(jnp.float32)

    if needs_mask:
        # Mask out-of-range rows of the (possibly partial / duplicated) block
        # using the *logical* (unclamped) block id.
        blk = i * nsplit + c
        row0 = blk * tile_rows
        rid = row0 + jax.lax.broadcasted_iota(jnp.int32, (tile_rows, LANES), 0)
        valid = rid < rows
        x = jnp.where(valid, x, 0.0)
        t = jnp.where(valid, t, 0.0)

    xt = x * t
    # Per-lane partial sums, accumulated vector-shaped in the resident output
    # block; the final cross-lane reduction happens once in the wrapper.
    out_ref[0, 0, :] += jnp.sum(xt, axis=0)   # sum(x * t)  -> TP
    out_ref[0, 1, :] += jnp.sum(x, axis=0)    # sum(x)
    out_ref[0, 2, :] += jnp.sum(t, axis=0)    # sum(t)


def _tversky_sums_2d(x2, t2):
    """x2/t2: (rows, 128) in their native dtypes.

    Returns f32 (3,): [sum(x*t), sum(x), sum(t)].
    """
    rows = x2.shape[0]
    tile_rows = rows if rows <= MAX_TILE_ROWS else MAX_TILE_ROWS
    num_blocks = (rows + tile_rows - 1) // tile_rows
    nsplit = NSPLIT if num_blocks >= NSPLIT else 1
    steps = (num_blocks + nsplit - 1) // nsplit
    clamp = (num_blocks % nsplit) != 0          # grid has a duplicated last slot
    needs_mask = clamp or (rows % tile_rows) != 0

    def in_map(c, i):
        blk = i * nsplit + c
        if clamp:
            # Keep the DMA in-bounds; the kernel masks the duplicate to zero.
            blk = jnp.minimum(blk, num_blocks - 1)
        return (blk, 0)

    kernel = functools.partial(
        _sums_kernel,
        tile_rows=tile_rows, rows=rows, nsplit=nsplit, needs_mask=needs_mask,
    )

    partials = pl.pallas_call(
        kernel,
        out_shape=jax.ShapeDtypeStruct((nsplit, 3, LANES), jnp.float32),
        grid_spec=pltpu.PrefetchScalarGridSpec(
            num_scalar_prefetch=0,
            grid=(nsplit, steps),
            in_specs=[
                pl.BlockSpec((tile_rows, LANES), in_map),
                pl.BlockSpec((tile_rows, LANES), in_map),
            ],
            out_specs=pl.BlockSpec((1, 3, LANES), lambda c, i: (c, 0, 0)),
        ),
        compiler_params=pltpu.CompilerParams(
            dimension_semantics=("parallel", "arbitrary"),
        ),
    )(x2, t2)

    # Combine per-core rows and per-lane partials (tiny, plain JAX).
    return jnp.sum(partials, axis=(0, 2))


def tversky_loss(inputs, targets, smooth=1.0, alpha=1.0, beta=1.0):
    """Matches TverskyLoss.forward: operates on flattened inputs/targets."""
    x = inputs.reshape(-1)
    t = targets.reshape(-1)
    n = x.shape[0]
    n_main = (n // LANES) * LANES

    sum_xt = jnp.float32(0.0)
    sum_x = jnp.float32(0.0)
    sum_t = jnp.float32(0.0)

    if n_main > 0:
        x_main = x if n_main == n else x[:n_main]
        t_main = t if n_main == n else t[:n_main]
        s = _tversky_sums_2d(
            x_main.reshape(n_main // LANES, LANES),
            t_main.reshape(n_main // LANES, LANES),
        )
        sum_xt, sum_x, sum_t = s[0], s[1], s[2]

    if n_main < n:
        # Ragged sub-128 tail: fewer than 128 elements, handled with plain JAX.
        x_tail = x[n_main:].astype(jnp.float32)
        t_tail = t[n_main:].astype(jnp.float32)
        sum_xt = sum_xt + jnp.sum(x_tail * t_tail)
        sum_x = sum_x + jnp.sum(x_tail)
        sum_t = sum_t + jnp.sum(t_tail)

    tp = sum_xt
    fp = sum_x - tp    # sum((1 - t) * x)
    fn = sum_t - tp    # sum(t * (1 - x))
    tversky = (tp + smooth) / (tp + alpha * fp + beta * fn + smooth)
    return 1.0 - tversky


def _ref_loss(x, y, smooth=1.0, alpha=1.0, beta=1.0):
    xf = x.reshape(-1).astype(jnp.float32)
    yf = y.reshape(-1).astype(jnp.float32)
    tp = jnp.sum(xf * yf)
    fp = jnp.sum((1.0 - yf) * xf)
    fn = jnp.sum(yf * (1.0 - xf))
    return 1.0 - (tp + smooth) / (tp + alpha * fp + beta * fn + smooth)


if __name__ == "__main__":
    key = jax.random.PRNGKey(0)
    k1, k2 = jax.random.split(key)

    # Primary example: NCHW probabilities + binary targets (flattened in the loss).
    x = jax.nn.sigmoid(jax.random.normal(k1, (2, 4, 16, 16), dtype=jnp.float32))
    y = (jax.random.uniform(k2, (2, 4, 16, 16)) > 0.5).astype(jnp.float32)

    loss = tversky_loss(x, y)
    jax.block_until_ready(loss)
    ref = _ref_loss(x, y)
    assert jnp.allclose(loss, ref, atol=1e-5, rtol=1e-5), (loss, ref)

    # Extra coverage: multi-block + partial last block, odd block count
    # (exercises the clamped duplicate slot), and a sub-128 ragged tail.
    for idx, shape in enumerate([(2, 4, 136, 136), (2, 4, 176, 200), (7, 13, 11)]):
        ka, kb = jax.random.split(jax.random.PRNGKey(idx + 1))
        xs = jax.nn.sigmoid(jax.random.normal(ka, shape, dtype=jnp.float32))
        ys = (jax.random.uniform(kb, shape) > 0.5).astype(jnp.float32)
        got = tversky_loss(xs, ys)
        jax.block_until_ready(got)
        want = _ref_loss(xs, ys)
        assert jnp.allclose(got, want, atol=1e-4, rtol=1e-4), (shape, got, want)

    print("KERNEL_OK")
</pallas_src>

<mosaic_0001>
module attributes {stable_mosaic.version = 11 : i64} {
  func.func @_sums_kernel(%arg0: i32, %arg1: i32, %arg2: memref<16x128xf32, #tpu.memory_space<vmem>>, %arg3: memref<16x128xf32, #tpu.memory_space<vmem>>, %arg4: memref<1x3x128xf32, #tpu.memory_space<vmem>>) attributes {dimension_semantics = [#tpu.dimension_semantics<parallel>, #tpu.dimension_semantics<arbitrary>], iteration_bounds = array<i64: 1, 1>, scalar_prefetch = 0 : i64, scratch_operands = 0 : i64, tpu.core_type = #tpu.core_type<tc>, window_params = [{transform_indices = @transform_0, window_bounds = array<i64: 16, 128>}, {transform_indices = @transform_1, window_bounds = array<i64: 16, 128>}, {transform_indices = @transform_2, window_bounds = array<i64: 1, 3, 128>}]} {
    %c0_i32 = arith.constant 0 : i32
    %0 = arith.cmpi eq, %arg1, %c0_i32 : i32
    %1 = arith.extui %0 : i1 to i32
    %c0_i32_0 = arith.constant 0 : i32
    %2 = arith.cmpi ne, %1, %c0_i32_0 : i32
    scf.if %2 {
      %cst_22 = arith.constant 0.000000e+00 : f32
      %27 = vector.broadcast %cst_22 : f32 to vector<1x3x128xf32>
      %c0_23 = arith.constant 0 : index
      %c0_24 = arith.constant 0 : index
      %c0_25 = arith.constant 0 : index
      %28 = vector.load %arg4[%c0_23, %c0_24, %c0_25] : memref<1x3x128xf32, #tpu.memory_space<vmem>>, vector<1x3x128xf32>
      tpu.vector_store %arg4[%c0_23, %c0_24, %c0_25], %27 {strides = array<i32>} : memref<1x3x128xf32, #tpu.memory_space<vmem>>, vector<1x3x128xf32>,
    } else {
    }
    %c0 = arith.constant 0 : index
    %c0_1 = arith.constant 0 : index
    %3 = vector.load %arg2[%c0, %c0_1] : memref<16x128xf32, #tpu.memory_space<vmem>>, vector<16x128xf32>
    %c0_2 = arith.constant 0 : index
    %c0_3 = arith.constant 0 : index
    %4 = vector.load %arg3[%c0_2, %c0_3] : memref<16x128xf32, #tpu.memory_space<vmem>>, vector<16x128xf32>
    %5 = arith.mulf %3, %4 : vector<16x128xf32>
    %c0_4 = arith.constant 0 : index
    %c0_5 = arith.constant 0 : index
    %c0_6 = arith.constant 0 : index
    %6 = vector.load %arg4[%c0_4, %c0_5, %c0_6] : memref<1x3x128xf32, #tpu.memory_space<vmem>>, vector<1x1x128xf32>
    %7 = vector.shape_cast %6 : vector<1x1x128xf32> to vector<128xf32>
    %cst = arith.constant dense<0.000000e+00> : vector<128xf32>
    %8 = vector.multi_reduction <add>, %5, %cst [0] : vector<16x128xf32> to vector<128xf32>
    %9 = arith.addf %7, %8 : vector<128xf32>
    %c0_7 = arith.constant 0 : index
    %c0_8 = arith.constant 0 : index
    %c0_9 = arith.constant 0 : index
    %10 = vector.load %arg4[%c0_7, %c0_8, %c0_9] : memref<1x3x128xf32, #tpu.memory_space<vmem>>, vector<1x1x128xf32>
    %11 = vector.shape_cast %10 : vector<1x1x128xf32> to vector<128xf32>
    %12 = vector.shape_cast %9 : vector<128xf32> to vector<1x1x128xf32>
    tpu.vector_store %arg4[%c0_7, %c0_8, %c0_9], %12 {strides = array<i32>} : memref<1x3x128xf32, #tpu.memory_space<vmem>>, vector<1x1x128xf32>,
    %c0_10 = arith.constant 0 : index
    %c1 = arith.constant 1 : index
    %c0_11 = arith.constant 0 : index
    %13 = vector.load %arg4[%c0_10, %c1, %c0_11] : memref<1x3x128xf32, #tpu.memory_space<vmem>>, vector<1x1x128xf32>
    %14 = vector.shape_cast %13 : vector<1x1x128xf32> to vector<128xf32>
    %cst_12 = arith.constant dense<0.000000e+00> : vector<128xf32>
    %15 = vector.multi_reduction <add>, %3, %cst_12 [0] : vector<16x128xf32> to vector<128xf32>
    %16 = arith.addf %14, %15 : vector<128xf32>
    %c0_13 = arith.constant 0 : index
    %c1_14 = arith.constant 1 : index
    %c0_15 = arith.constant 0 : index
    %17 = vector.load %arg4[%c0_13, %c1_14, %c0_15] : memref<1x3x128xf32, #tpu.memory_space<vmem>>, vector<1x1x128xf32>
    %18 = vector.shape_cast %17 : vector<1x1x128xf32> to vector<128xf32>
    %19 = vector.shape_cast %16 : vector<128xf32> to vector<1x1x128xf32>
    tpu.vector_store %arg4[%c0_13, %c1_14, %c0_15], %19 {strides = array<i32>} : memref<1x3x128xf32, #tpu.memory_space<vmem>>, vector<1x1x128xf32>,
    %c0_16 = arith.constant 0 : index
    %c2 = arith.constant 2 : index
    %c0_17 = arith.constant 0 : index
    %20 = vector.load %arg4[%c0_16, %c2, %c0_17] : memref<1x3x128xf32, #tpu.memory_space<vmem>>, vector<1x1x128xf32>
    %21 = vector.shape_cast %20 : vector<1x1x128xf32> to vector<128xf32>
    %cst_18 = arith.constant dense<0.000000e+00> : vector<128xf32>
    %22 = vector.multi_reduction <add>, %4, %cst_18 [0] : vector<16x128xf32> to vector<128xf32>
    %23 = arith.addf %21, %22 : vector<128xf32>
    %c0_19 = arith.constant 0 : index
    %c2_20 = arith.constant 2 : index
    %c0_21 = arith.constant 0 : index
    %24 = vector.load %arg4[%c0_19, %c2_20, %c0_21] : memref<1x3x128xf32, #tpu.memory_space<vmem>>, vector<1x1x128xf32>
    %25 = vector.shape_cast %24 : vector<1x1x128xf32> to vector<128xf32>
    %26 = vector.shape_cast %23 : vector<128xf32> to vector<1x1x128xf32>
    tpu.vector_store %arg4[%c0_19, %c2_20, %c0_21], %26 {strides = array<i32>} : memref<1x3x128xf32, #tpu.memory_space<vmem>>, vector<1x1x128xf32>,
    return
  }
  func.func @transform_0(%arg0: i32, %arg1: i32) -> (i32, i32) {
    %c1_i32 = arith.constant 1 : i32
    %0 = arith.muli %arg1, %c1_i32 : i32
    %1 = arith.addi %0, %arg0 : i32
    %c0_i32 = arith.constant 0 : i32
    %c0_i32_0 = arith.constant 0 : i32
    return %1, %c0_i32 : i32, i32
  }
  func.func @transform_1(%arg0: i32, %arg1: i32) -> (i32, i32) {
    %c1_i32 = arith.constant 1 : i32
    %0 = arith.muli %arg1, %c1_i32 : i32
    %1 = arith.addi %0, %arg0 : i32
    %c0_i32 = arith.constant 0 : i32
    %c0_i32_0 = arith.constant 0 : i32
    return %1, %c0_i32 : i32, i32
  }
  func.func @transform_2(%arg0: i32, %arg1: i32) -> (i32, i32, i32) {
    %c0_i32 = arith.constant 0 : i32
    %c0_i32_0 = arith.constant 0 : i32
    %c0_i32_1 = arith.constant 0 : i32
    return %arg0, %c0_i32, %c0_i32_0 : i32, i32, i32
  }
}

</mosaic_0001>

<bundles_post_ra>
// kernel: tpu_custom_call.1
= control target key start
LH: loop header
LB: loop body
LE: loop exit
PB: predicated region body
PF: predicated region fallthrough
CT: control target
= control target key end

     0   :  { %7 = vsyncpa [#allocation3], 0  ;;  %s216_s0 = inlined_call_operand.hbm [shape: f32[16,128], index: 0, kind: input, shape index: {}]   ;;  %s217_s1 = inlined_call_operand.hbm [shape: f32[16,128], index: 1, kind: input, shape index: {}]   ;;  %s218_s2 = inlined_call_operand.vmem [shape: f32[1,3,128], index: 2, kind: output, shape index: {}]  }
   0x1   :  { %8 = vsyncpa [#allocation5], 0  ;;  %s151_s9 = smov [#allocation2]   ;;  %s103_s13 = scalar_lea.hbm %s216_s0, 256 }
   0x2   :  { %s18_s10 = sshll.u32 %s151_s9, 4  ;;  %p104_p0 = scmp.ne.s32.totalorder %s216_s0, %s103_s13  ;;  %s19_s10 = int_to_ptr.vmem [resolvable:$true] %s18_s10 }
   0x3   :  { %p107_p1 = scmp.lt.u32.totalorder %s103_s13, %s216_s0 }
   0x5   :  { %p109_p2 = pnand %p107_p1, %p104_p0 }
   0x7   :  { %112 = shalt.err (!%p109_p2)
}
   0x8   :  { %s113_s18 = scalar_lea.vmem %s19_s10, 256  ;;  %p118_p4 = scmp.lt.s32.totalorder %s19_s10, %s19_s10 }
   0x9   :  { %p114_p3 = scmp.ne.s32.totalorder %s19_s10, %s113_s18  ;;  %p119_p5 = scmp.lt.s32.totalorder %s113_s18, %s113_s18 }
   0xb   :  { %p120_p6 = por %p119_p5, %p118_p4 }
   0xd   :  { %p121_p7 = pnand %p120_p6, %p114_p3 }
   0xf   :  { %124 = shalt.err (!%p121_p7)
}
  0x10   :  { %s152_s19 = smov 128   ;;  %s153_s20 = smov 8  }
  0x11   :  { %24 = dma.hbm_to_vmem [thread:$0]  %s216_s0, 256, %s19_s10, [#allocation3], %s152_s19, %s152_s19, %s153_s20  }
  0x12   :  { %s154_s23 = smov [#allocation4]   ;;  %s125_s27 = scalar_lea.hbm %s217_s1, 256 }
  0x13   :  { %s34_s24 = sshll.u32 %s154_s23, 4  ;;  %p126_p8 = scmp.ne.s32.totalorder %s217_s1, %s125_s27  ;;  %s35_s24 = int_to_ptr.vmem [resolvable:$true] %s34_s24 }
  0x14   :  { %p129_p9 = scmp.lt.u32.totalorder %s125_s27, %s217_s1 }
  0x16   :  { %p131_p10 = pnand %p129_p9, %p126_p8 }
  0x18   :  { %134 = shalt.err (!%p131_p10)
}
  0x19   :  { %s135_s4 = scalar_lea.vmem %s35_s24, 256  ;;  %p140_p12 = scmp.lt.s32.totalorder %s35_s24, %s35_s24 }
  0x1a   :  { %p136_p11 = scmp.ne.s32.totalorder %s35_s24, %s135_s4  ;;  %p141_p13 = scmp.lt.s32.totalorder %s135_s4, %s135_s4 }
  0x1c   :  { %p142_p0 = por %p141_p13, %p140_p12 }
  0x1e   :  { %p143_p1 = pnand %p142_p0, %p136_p11 }
  0x20   :  { %146 = shalt.err (!%p143_p1)
}
  0x21   :  { %40 = dma.hbm_to_vmem [thread:$0]  %s217_s1, 256, %s35_s24, [#allocation5], %s152_s19, %s152_s19, %s153_s20  }
  0x22   :  { %147 = dma.done.wait [#allocation3], 256  }
  0x23   :  { %148 = vsyncadd [#allocation3], 4294967040 }
  0x24   :  { %149 = dma.done.wait [#allocation5], 256  }
  0x25   :  { %150 = vsyncadd [#allocation5], 4294967040  ;;  %v155_v0 = vmov 0.0   ;;  %v56_v1 = vld [vmem:[#allocation2] sm:$0xff]  ;;  %v57_v2 = vld [vmem:[#allocation2 + $0x8] sm:$0xff] }
  0x26   :  { %55 = vst [vmem:[%s218_s2] sm:$0x7] %v155_v0  ;;  %v58_v3 = vld [vmem:[#allocation4] sm:$0xff]  ;;  %v59_v4 = vld [vmem:[#allocation4 + $0x8] sm:$0xff]  ;;  %v73_v6 = vadd.f32 %v57_v2, %v56_v1 }
  0x27   :  { %v60_v5 = vmul.f32 %v58_v3, %v56_v1  ;;  %v61_v7 = vmul.f32 %v59_v4, %v57_v2  ;;  %v83_v8 = vadd.f32 %v59_v4, %v58_v3 }
  0x28   :  { %v74_v9 = vrot.slane %v73_v6, 4 }
  0x29   :  { %v63_v10 = vadd.f32 %v61_v7, %v60_v5  ;;  %v84_v11 = vrot.slane %v83_v8, 4 }
  0x2a   :  { %v75_v12 = vadd.f32 %v74_v9, %v73_v6 }
  0x2b   :  { %v64_v13 = vrot.slane %v63_v10, 4  ;;  %v85_v14 = vadd.f32 %v84_v11, %v83_v8 }
  0x2c   :  { %v76_v15 = vrot.slane %v75_v12, 2 }
  0x2d   :  { %v65_v16 = vadd.f32 %v64_v13, %v63_v10  ;;  %v86_v17 = vrot.slane %v85_v14, 2  ;;  %v72_v23 = vld [vmem:[%s218_s2 + $0x1] sm:$0x1]  ;;  %v82_v26 = vld [vmem:[%s218_s2 + $0x2] sm:$0x1] }
  0x2e   :  { %v77_v18 = vadd.f32 %v76_v15, %v75_v12  ;;  %v62_v29 = vld [vmem:[%s218_s2] sm:$0x1] }
  0x2f   :  { %v66_v19 = vrot.slane %v65_v16, 2  ;;  %v87_v20 = vadd.f32 %v86_v17, %v85_v14 }
  0x30   :  { %v78_v21 = vrot.slane %v77_v18, 1 }
  0x31   :  { %v67_v22 = vadd.f32 %v66_v19, %v65_v16  ;;  %v88_v24 = vrot.slane %v87_v20, 1 }
  0x32   :  { %v79_v25 = vadd.f32 %v78_v21, %v77_v18 }
  0x33   :  { %v68_v27 = vrot.slane %v67_v22, 1  ;;  %v89_v28 = vadd.f32 %v88_v24, %v87_v20 }
  0x34   :  { %v80_v30 = vadd.f32 %v79_v25, %v72_v23 }
  0x35   :  { %v69_v31 = vadd.f32 %v68_v27, %v67_v22  ;;  %v90_v32 = vadd.f32 %v89_v28, %v82_v26 }
  0x36   :  { %81 = vst [vmem:[%s218_s2 + $0x1] sm:$0x1] %v80_v30 }
  0x37   :  { %v70_v33 = vadd.f32 %v69_v31, %v62_v29  ;;  %91 = vst [vmem:[%s218_s2 + $0x2] sm:$0x1] %v90_v32 }
  0x39   :  { %71 = vst [vmem:[%s218_s2] sm:$0x1] %v70_v33 }
  0x3a   :  { %96 = vsyncpa [#allocation3], 1 }
  0x3b   :  { %97 = vsyncpa [#allocation5], 1 }

</bundles_post_ra>
